<compile_context>
chip_gen: v7x
topology: tpu7x:2x2x1
jax: 0.10.0
libtpu: 0.0.40
codegen_flags: <defaults>
</compile_context>

<pallas_src>
import functools

import jax
import jax.numpy as jnp
from jax import lax
from jax.experimental import pallas as pl
from jax.experimental.pallas import tpu as pltpu


def _round_up(x, m):
    return (x + m - 1) // m * m


def _block_conv_kernel(x_ref, w1_ref, b1_ref, mask_ref, w2_ref, b2_ref,
                       out_ref, *, Wp, mxu_dtype):
    """One grid step: Conv3x3+ReLU -> Conv3x3+ReLU on a flattened slab.

    x_ref    : (1, Cin_p, L)      zero-padded images, batch folded into lanes
    w1_ref   : (Cout_p, 9*Cin_p)  im2col-packed conv1 weights
    b1_ref   : (Cout_p, 1)        f32
    mask_ref : (1, L)             f32, 1.0 on valid HxW positions else 0.0
    w2_ref   : (Cout_p, 9*Cout_p) im2col-packed conv2 weights
    b2_ref   : (Cout_p, 1)        f32
    out_ref  : (1, Cout_p, L)     conv2 band (valid positions sliced outside)
    """
    # Build taps in f32 (rolls/concat on tile-aligned f32 slabs); cast the
    # full im2col patch to the MXU dtype just before each matmul.
    x = x_ref[0].astype(jnp.float32)            # (Cin_p, L)
    L = x.shape[-1]
    w1 = w1_ref[...]
    w2 = w2_ref[...]
    b1 = b1_ref[...]                            # (Cout_p, 1) f32
    b2 = b2_ref[...]
    mask = mask_ref[...]                        # (1, L) f32

    offsets = tuple(dh * Wp + dw for dh in (-1, 0, 1) for dw in (-1, 0, 1))

    def taps(a):
        # tap[q] = a[q + off]  (jnp.roll convention: roll by -off)
        return [a if off == 0 else pltpu.roll(a, shift=(-off) % L, axis=1)
                for off in offsets]

    # ---- conv1: one im2col matmul over the whole slab ----
    patch1 = jnp.concatenate(taps(x), axis=0)   # (9*Cin_p, L) f32
    if mxu_dtype is not None:
        patch1 = patch1.astype(mxu_dtype)
    h1 = jnp.dot(w1, patch1, preferred_element_type=jnp.float32)
    # bias + ReLU in f32, then zero the halo/pad positions -> valid conv2 input
    y1 = jnp.maximum(h1 + b1, 0.0) * mask       # (Cout_p, L) f32

    # ---- conv2: one im2col matmul over the whole slab ----
    patch2 = jnp.concatenate(taps(y1), axis=0)  # (9*Cout_p, L) f32
    if mxu_dtype is not None:
        patch2 = patch2.astype(mxu_dtype)
    h2 = jnp.dot(w2, patch2, preferred_element_type=jnp.float32)
    out_ref[0] = jnp.maximum(h2 + b2, 0.0).astype(out_ref.dtype)


def block_conv_pallas(x_nchw, w1, b1, w2, b2, *, batch_block=None,
                      mxu_dtype=None, vmem_budget_bytes=24 * 2**20):
    """Forward pass of Block_conv.

    x_nchw : (N, Cin, H, W)  float32
    w1     : (Cout, Cin, 3, 3), b1: (Cout,)
    w2     : (Cout, Cout, 3, 3), b2: (Cout,)
    returns: (N, Cout, H, W) float32
    """
    N, Cin, H, W = x_nchw.shape
    Cout = w1.shape[0]
    assert w1.shape == (Cout, Cin, 3, 3) and w2.shape == (Cout, Cout, 3, 3)

    f32 = jnp.float32
    Cin_p = _round_up(Cin, 8)            # sublane-tile aligned channels
    Cout_p = _round_up(Cout, 8)
    Hp, Wp = H + 2, W + 2                # 1-pixel zero halo per image
    S = Hp * Wp
    Sp = _round_up(S, 128)               # lane-dense per-image segment

    in_elt = 2 if mxu_dtype == jnp.bfloat16 else 4
    # Rough per-image VMEM working set: double-buffered in/out blocks, rolled
    # taps + im2col patches, and the f32 y1 band.
    per_image = Sp * (2 * Cin_p * in_elt + 2 * Cout_p * 4
                      + 18 * Cin_p * 4 + 18 * Cout_p * 4
                      + 3 * Cout_p * 4)

    if batch_block is None:
        # Largest divisor of N that keeps >=2 grid steps when N >= 2 (both v7x
        # TensorCores get work) and fits the VMEM budget.
        batch_block = 1
        for d in range(1, max(N // 2, 1) + 1):
            if N % d == 0 and d * per_image <= vmem_budget_bytes:
                batch_block = d
    if N % batch_block != 0:
        raise ValueError(f"batch_block={batch_block} must divide N={N}")

    B = batch_block
    G = N // B
    L = B * Sp

    # ---- host-side packing ----
    x = x_nchw.astype(f32)
    x = jnp.pad(x, ((0, 0), (0, Cin_p - Cin), (1, 1), (1, 1)))  # (N,Cin_p,Hp,Wp)
    x = x.reshape(N, Cin_p, S)
    x = jnp.pad(x, ((0, 0), (0, 0), (0, Sp - S)))                # (N,Cin_p,Sp)
    if mxu_dtype is not None:
        x = x.astype(mxu_dtype)                                  # halve HBM bytes
    # Fold batch into the lane dimension: (G, Cin_p, B*Sp).
    x = x.reshape(G, B, Cin_p, Sp).transpose(0, 2, 1, 3).reshape(G, Cin_p, L)

    def pack(w, ci_p):
        wp = jnp.pad(w.astype(f32), ((0, Cout_p - w.shape[0]),
                                     (0, ci_p - w.shape[1]), (0, 0), (0, 0)))
        wm = jnp.transpose(wp, (0, 2, 3, 1)).reshape(Cout_p, 9 * ci_p)
        return wm.astype(mxu_dtype) if mxu_dtype is not None else wm

    w1m = pack(w1, Cin_p)                                        # (Cout_p, 9*Cin_p)
    w2m = pack(w2, Cout_p)                                       # (Cout_p, 9*Cout_p)
    b1c = jnp.pad(b1.astype(f32), (0, Cout_p - Cout)).reshape(Cout_p, 1)
    b2c = jnp.pad(b2.astype(f32), (0, Cout_p - Cout)).reshape(Cout_p, 1)

    # Multiplicative mask: 1.0 on the valid HxW interior of each image's
    # padded segment, 0.0 on the halo ring and lane-padding tail.
    pos = jnp.arange(Sp, dtype=jnp.int32)
    r, c = pos // Wp, pos % Wp
    valid = (pos < S) & (r >= 1) & (r <= H) & (c >= 1) & (c <= W)
    mask = jnp.tile(valid.astype(f32), (B,)).reshape(1, L)

    kernel = functools.partial(_block_conv_kernel, Wp=Wp, mxu_dtype=mxu_dtype)

    vmem_limit = int(min(64 * 2**20, max(16 * 2**20, 2 * B * per_image)))

    out = pl.pallas_call(
        kernel,
        out_shape=jax.ShapeDtypeStruct((G, Cout_p, L), f32),
        grid_spec=pltpu.PrefetchScalarGridSpec(
            num_scalar_prefetch=0,
            grid=(G,),
            in_specs=[
                pl.BlockSpec((1, Cin_p, L), lambda g: (g, 0, 0)),
                pl.BlockSpec((Cout_p, 9 * Cin_p), lambda g: (0, 0)),
                pl.BlockSpec((Cout_p, 1), lambda g: (0, 0)),
                pl.BlockSpec((1, L), lambda g: (0, 0)),
                pl.BlockSpec((Cout_p, 9 * Cout_p), lambda g: (0, 0)),
                pl.BlockSpec((Cout_p, 1), lambda g: (0, 0)),
            ],
            out_specs=pl.BlockSpec((1, Cout_p, L), lambda g: (g, 0, 0)),
        ),
        compiler_params=pltpu.CompilerParams(
            dimension_semantics=("parallel",),
            vmem_limit_bytes=vmem_limit),
    )(x, w1m, b1c, mask, w2m, b2c)

    # (G, Cout_p, B*Sp) -> (N, Cout, H, W): un-fold batch, drop channel / lane
    # padding and the 1-pixel halo.
    out = (out.reshape(G, Cout_p, B, Sp)
              .transpose(0, 2, 1, 3)
              .reshape(N, Cout_p, Sp)[:, :Cout, :S]
              .reshape(N, Cout, Hp, Wp)[:, :, 1:H + 1, 1:W + 1])
    return out


def _reference(x_nchw, w1, b1, w2, b2):
    """Pure-JAX reference (NCHW, like PyTorch)."""
    dn = ("NCHW", "OIHW", "NCHW")
    y = lax.conv_general_dilated(x_nchw, w1, (1, 1), ((1, 1), (1, 1)),
                                 dimension_numbers=dn)
    y = jnp.maximum(y + b1[None, :, None, None], 0.0)
    y = lax.conv_general_dilated(y, w2, (1, 1), ((1, 1), (1, 1)),
                                 dimension_numbers=dn)
    y = jnp.maximum(y + b2[None, :, None, None], 0.0)
    return y


if __name__ == "__main__":
    key = jax.random.PRNGKey(0)
    kx, k1, k2, k3, k4 = jax.random.split(key, 5)

    N, Cin, Cout, H, W = 2, 4, 8, 16, 16

    x = jax.random.normal(kx, (N, Cin, H, W), dtype=jnp.float32)

    # deterministic "kaiming-ish" init consistent with nn.Conv2d shapes
    fan_in1 = Cin * 3 * 3
    fan_in2 = Cout * 3 * 3
    w1 = jax.random.uniform(k1, (Cout, Cin, 3, 3), jnp.float32,
                            -1.0, 1.0) / jnp.sqrt(fan_in1)
    b1 = jax.random.uniform(k2, (Cout,), jnp.float32,
                            -1.0, 1.0) / jnp.sqrt(fan_in1)
    w2 = jax.random.uniform(k3, (Cout, Cout, 3, 3), jnp.float32,
                            -1.0, 1.0) / jnp.sqrt(fan_in2)
    b2 = jax.random.uniform(k4, (Cout,), jnp.float32,
                            -1.0, 1.0) / jnp.sqrt(fan_in2)

    ref = _reference(x, w1, b1, w2, b2)

    # f32 path (default) — matches PyTorch numerics.
    out = jax.block_until_ready(block_conv_pallas(x, w1, b1, w2, b2))
    assert out.shape == (N, Cout, H, W)
    assert jnp.allclose(out, ref, atol=1e-4, rtol=1e-4), (
        float(jnp.max(jnp.abs(out - ref))))

    # bf16-fed MXU path (recommended on v6e/v7x) — f32 accumulation, loose tol.
    out_bf16 = jax.block_until_ready(
        block_conv_pallas(x, w1, b1, w2, b2, mxu_dtype=jnp.bfloat16))
    assert jnp.allclose(out_bf16, ref, atol=5e-2, rtol=5e-2), (
        float(jnp.max(jnp.abs(out_bf16 - ref))))

    print("KERNEL_OK")
</pallas_src>

<mosaic_0001>
module attributes {stable_mosaic.version = 11 : i64} {
  func.func @_block_conv_kernel(%arg0: i32, %arg1: memref<1x8x384xf32, #tpu.memory_space<vmem>>, %arg2: memref<8x72xf32, #tpu.memory_space<vmem>>, %arg3: memref<8x1xf32, #tpu.memory_space<vmem>>, %arg4: memref<1x384xf32, #tpu.memory_space<vmem>>, %arg5: memref<8x72xf32, #tpu.memory_space<vmem>>, %arg6: memref<8x1xf32, #tpu.memory_space<vmem>>, %arg7: memref<1x8x384xf32, #tpu.memory_space<vmem>>) attributes {dimension_semantics = [#tpu.dimension_semantics<parallel>], iteration_bounds = array<i64: 2>, scalar_prefetch = 0 : i64, scratch_operands = 0 : i64, tpu.core_type = #tpu.core_type<tc>, window_params = [{transform_indices = @transform_0, window_bounds = array<i64: 1, 8, 384>}, {pipeline_mode = #tpu.pipeline_mode<synchronous>, transform_indices = @transform_1, window_bounds = array<i64: 8, 72>}, {pipeline_mode = #tpu.pipeline_mode<synchronous>, transform_indices = @transform_2, window_bounds = array<i64: 8, 1>}, {pipeline_mode = #tpu.pipeline_mode<synchronous>, transform_indices = @transform_3, window_bounds = array<i64: 1, 384>}, {pipeline_mode = #tpu.pipeline_mode<synchronous>, transform_indices = @transform_4, window_bounds = array<i64: 8, 72>}, {pipeline_mode = #tpu.pipeline_mode<synchronous>, transform_indices = @transform_5, window_bounds = array<i64: 8, 1>}, {transform_indices = @transform_6, window_bounds = array<i64: 1, 8, 384>}]} {
    %c0 = arith.constant 0 : index
    %c0_0 = arith.constant 0 : index
    %c0_1 = arith.constant 0 : index
    %0 = vector.load %arg1[%c0, %c0_0, %c0_1] : memref<1x8x384xf32, #tpu.memory_space<vmem>>, vector<1x8x384xf32>
    %1 = vector.shape_cast %0 : vector<1x8x384xf32> to vector<8x384xf32>
    %c0_2 = arith.constant 0 : index
    %c0_3 = arith.constant 0 : index
    %2 = vector.load %arg2[%c0_2, %c0_3] : memref<8x72xf32, #tpu.memory_space<vmem>>, vector<8x72xf32>
    %c0_4 = arith.constant 0 : index
    %c0_5 = arith.constant 0 : index
    %3 = vector.load %arg5[%c0_4, %c0_5] : memref<8x72xf32, #tpu.memory_space<vmem>>, vector<8x72xf32>
    %c0_6 = arith.constant 0 : index
    %c0_7 = arith.constant 0 : index
    %4 = vector.load %arg3[%c0_6, %c0_7] : memref<8x1xf32, #tpu.memory_space<vmem>>, vector<8x1xf32>
    %c0_8 = arith.constant 0 : index
    %c0_9 = arith.constant 0 : index
    %5 = vector.load %arg6[%c0_8, %c0_9] : memref<8x1xf32, #tpu.memory_space<vmem>>, vector<8x1xf32>
    %c0_10 = arith.constant 0 : index
    %c0_11 = arith.constant 0 : index
    %6 = vector.load %arg4[%c0_10, %c0_11] : memref<1x384xf32, #tpu.memory_space<vmem>>, vector<1x384xf32>
    %c19_i32 = arith.constant 19 : i32
    %7 = tpu.dynamic_rotate %1 by %c19_i32 dim 1 : vector<8x384xf32>, i32 -> vector<8x384xf32>
    %c18_i32 = arith.constant 18 : i32
    %8 = tpu.dynamic_rotate %1 by %c18_i32 dim 1 : vector<8x384xf32>, i32 -> vector<8x384xf32>
    %c17_i32 = arith.constant 17 : i32
    %9 = tpu.dynamic_rotate %1 by %c17_i32 dim 1 : vector<8x384xf32>, i32 -> vector<8x384xf32>
    %c1_i32 = arith.constant 1 : i32
    %10 = tpu.dynamic_rotate %1 by %c1_i32 dim 1 : vector<8x384xf32>, i32 -> vector<8x384xf32>
    %c383_i32 = arith.constant 383 : i32
    %11 = tpu.dynamic_rotate %1 by %c383_i32 dim 1 : vector<8x384xf32>, i32 -> vector<8x384xf32>
    %c367_i32 = arith.constant 367 : i32
    %12 = tpu.dynamic_rotate %1 by %c367_i32 dim 1 : vector<8x384xf32>, i32 -> vector<8x384xf32>
    %c366_i32 = arith.constant 366 : i32
    %13 = tpu.dynamic_rotate %1 by %c366_i32 dim 1 : vector<8x384xf32>, i32 -> vector<8x384xf32>
    %c365_i32 = arith.constant 365 : i32
    %14 = tpu.dynamic_rotate %1 by %c365_i32 dim 1 : vector<8x384xf32>, i32 -> vector<8x384xf32>
    %15 = tpu.concatenate %7, %8, %9, %10, %1, %11, %12, %13, %14 in 0 : vector<8x384xf32>, vector<8x384xf32>, vector<8x384xf32>, vector<8x384xf32>, vector<8x384xf32>, vector<8x384xf32>, vector<8x384xf32>, vector<8x384xf32>, vector<8x384xf32> -> vector<72x384xf32>
    %cst = arith.constant dense<0.000000e+00> : vector<8x384xf32>
    %16 = tpu.matmul %2, %15, %cst {dimension_numbers = #tpu.dot_dimension_numbers<[1], [0], [0], [1], [0, 0, 1, 1], [], []>} : vector<8x72xf32>, vector<72x384xf32>, vector<8x384xf32> -> vector<8x384xf32>
    %17 = vector.broadcast %4 : vector<8x1xf32> to vector<8x384xf32>
    %18 = arith.addf %16, %17 : vector<8x384xf32>
    %cst_12 = arith.constant 0.000000e+00 : f32
    %19 = vector.broadcast %cst_12 : f32 to vector<8x384xf32>
    %20 = arith.maximumf %18, %19 : vector<8x384xf32>
    %21 = vector.broadcast %6 : vector<1x384xf32> to vector<8x384xf32>
    %22 = arith.mulf %20, %21 : vector<8x384xf32>
    %c19_i32_13 = arith.constant 19 : i32
    %23 = tpu.dynamic_rotate %22 by %c19_i32_13 dim 1 : vector<8x384xf32>, i32 -> vector<8x384xf32>
    %c18_i32_14 = arith.constant 18 : i32
    %24 = tpu.dynamic_rotate %22 by %c18_i32_14 dim 1 : vector<8x384xf32>, i32 -> vector<8x384xf32>
    %c17_i32_15 = arith.constant 17 : i32
    %25 = tpu.dynamic_rotate %22 by %c17_i32_15 dim 1 : vector<8x384xf32>, i32 -> vector<8x384xf32>
    %c1_i32_16 = arith.constant 1 : i32
    %26 = tpu.dynamic_rotate %22 by %c1_i32_16 dim 1 : vector<8x384xf32>, i32 -> vector<8x384xf32>
    %c383_i32_17 = arith.constant 383 : i32
    %27 = tpu.dynamic_rotate %22 by %c383_i32_17 dim 1 : vector<8x384xf32>, i32 -> vector<8x384xf32>
    %c367_i32_18 = arith.constant 367 : i32
    %28 = tpu.dynamic_rotate %22 by %c367_i32_18 dim 1 : vector<8x384xf32>, i32 -> vector<8x384xf32>
    %c366_i32_19 = arith.constant 366 : i32
    %29 = tpu.dynamic_rotate %22 by %c366_i32_19 dim 1 : vector<8x384xf32>, i32 -> vector<8x384xf32>
    %c365_i32_20 = arith.constant 365 : i32
    %30 = tpu.dynamic_rotate %22 by %c365_i32_20 dim 1 : vector<8x384xf32>, i32 -> vector<8x384xf32>
    %31 = tpu.concatenate %23, %24, %25, %26, %22, %27, %28, %29, %30 in 0 : vector<8x384xf32>, vector<8x384xf32>, vector<8x384xf32>, vector<8x384xf32>, vector<8x384xf32>, vector<8x384xf32>, vector<8x384xf32>, vector<8x384xf32>, vector<8x384xf32> -> vector<72x384xf32>
    %cst_21 = arith.constant dense<0.000000e+00> : vector<8x384xf32>
    %32 = tpu.matmul %3, %31, %cst_21 {dimension_numbers = #tpu.dot_dimension_numbers<[1], [0], [0], [1], [0, 0, 1, 1], [], []>} : vector<8x72xf32>, vector<72x384xf32>, vector<8x384xf32> -> vector<8x384xf32>
    %33 = vector.broadcast %5 : vector<8x1xf32> to vector<8x384xf32>
    %34 = arith.addf %32, %33 : vector<8x384xf32>
    %cst_22 = arith.constant 0.000000e+00 : f32
    %35 = vector.broadcast %cst_22 : f32 to vector<8x384xf32>
    %36 = arith.maximumf %34, %35 : vector<8x384xf32>
    %c0_23 = arith.constant 0 : index
    %c0_24 = arith.constant 0 : index
    %c0_25 = arith.constant 0 : index
    %37 = vector.load %arg7[%c0_23, %c0_24, %c0_25] : memref<1x8x384xf32, #tpu.memory_space<vmem>>, vector<1x8x384xf32>
    %38 = vector.shape_cast %37 : vector<1x8x384xf32> to vector<8x384xf32>
    %39 = vector.shape_cast %36 : vector<8x384xf32> to vector<1x8x384xf32>
    tpu.vector_store %arg7[%c0_23, %c0_24, %c0_25], %39 {strides = array<i32>} : memref<1x8x384xf32, #tpu.memory_space<vmem>>, vector<1x8x384xf32>,
    return
  }
  func.func @transform_0(%arg0: i32) -> (i32, i32, i32) {
    %c0_i32 = arith.constant 0 : i32
    %c0_i32_0 = arith.constant 0 : i32
    %c0_i32_1 = arith.constant 0 : i32
    return %arg0, %c0_i32, %c0_i32_0 : i32, i32, i32
  }
  func.func @transform_1(%arg0: i32) -> (i32, i32) {
    %c0_i32 = arith.constant 0 : i32
    %c0_i32_0 = arith.constant 0 : i32
    %c0_i32_1 = arith.constant 0 : i32
    return %c0_i32, %c0_i32_0 : i32, i32
  }
  func.func @transform_2(%arg0: i32) -> (i32, i32) {
    %c0_i32 = arith.constant 0 : i32
    %c0_i32_0 = arith.constant 0 : i32
    %c0_i32_1 = arith.constant 0 : i32
    return %c0_i32, %c0_i32_0 : i32, i32
  }
  func.func @transform_3(%arg0: i32) -> (i32, i32) {
    %c0_i32 = arith.constant 0 : i32
    %c0_i32_0 = arith.constant 0 : i32
    %c0_i32_1 = arith.constant 0 : i32
    return %c0_i32, %c0_i32_0 : i32, i32
  }
  func.func @transform_4(%arg0: i32) -> (i32, i32) {
    %c0_i32 = arith.constant 0 : i32
    %c0_i32_0 = arith.constant 0 : i32
    %c0_i32_1 = arith.constant 0 : i32
    return %c0_i32, %c0_i32_0 : i32, i32
  }
  func.func @transform_5(%arg0: i32) -> (i32, i32) {
    %c0_i32 = arith.constant 0 : i32
    %c0_i32_0 = arith.constant 0 : i32
    %c0_i32_1 = arith.constant 0 : i32
    return %c0_i32, %c0_i32_0 : i32, i32
  }
  func.func @transform_6(%arg0: i32) -> (i32, i32, i32) {
    %c0_i32 = arith.constant 0 : i32
    %c0_i32_0 = arith.constant 0 : i32
    %c0_i32_1 = arith.constant 0 : i32
    return %arg0, %c0_i32, %c0_i32_0 : i32, i32, i32
  }
}

</mosaic_0001>

<bundles_post_ra>
// kernel: tpu_custom_call.1
= control target key start
LH: loop header
LB: loop body
LE: loop exit
PB: predicated region body
PF: predicated region fallthrough
CT: control target
= control target key end

     0   :  { %11 = vsyncpa [#allocation3], 0  ;;  %s1635_s0 = inlined_call_operand.hbm [shape: f32[2,8,384], index: 0, kind: input, shape index: {}]   ;;  %s1636_s1 = inlined_call_operand.vmem [shape: f32[8,72], index: 1, kind: input, shape index: {}]   ;;  %s1637_s2 = inlined_call_operand.vmem [shape: f32[8,1], index: 2, kind: input, shape index: {}]   ;;  %s1638_s3 = inlined_call_operand.vmem [shape: f32[1,384], index: 3, kind: input, shape index: {}]   ;;  %s1639_s4 = inlined_call_operand.vmem [shape: f32[8,72], index: 4, kind: input, shape index: {}]   ;;  %s1640_s5 = inlined_call_operand.vmem [shape: f32[8,1], index: 5, kind: input, shape index: {}]   ;;  %s1641_s6 = inlined_call_operand.hbm [shape: f32[2,8,384], index: 6, kind: output, shape index: {}]  }
   0x1   :  { %13 = vsyncpa [#allocation3 + $0x1], 0 }
   0x2   :  { %14 = vsyncpa [#allocation4], 0 }
   0x3   :  { %16 = vsyncpa [#allocation4 + $0x1], 0  ;;  %s1253_s21 = smov 0   ;;  %s1255_s22 = smov 0  }
   0x4   :  { %s1257_s23 = smov 0   ;;  %s1259_s24 = smov 0  }
   0x5 LB: > { %s1274_s25 = sadd.s32 4294967295, %s1202_s24   ;;  %s842_s26 = sadd.s32 4294967294, %s1202_s24   ;;  %s1202_s24 = sphi %s1259_s24, %s1655_s24   ;;  %s1198_s23 = sphi %s1257_s23, %s1654_s23   ;;  %s1194_s22 = sphi %s1255_s22, %s1653_s22   ;;  %s1190_s21 = sphi %s1253_s21, %s1652_s21  }
   0x6   : > { %s1278_s27 = sadd.s32 1, %s1202_s24   ;;  %s29_s28 = sadd.s32 1, %s1198_s23 }
   0x7   : > { %s26_s29 = ssub.s32 %s1202_s24, %s1278_s27  ;;  %p36_p0 = scmp.ne.s32.totalorder %s1198_s23, %s1194_s22 }
   0x8   : > { %p27_p1 = scmp.eq.s32.totalorder %s26_s29, 0  ;;  %p37_p2 = scmp.eq.s32.totalorder %s1202_s24, 0 }
   0x9   : > { %p42_p3 = scmp.ne.s32.totalorder %s1194_s22, %s1190_s21  ;;  %p43_p4 = scmp.eq.s32.totalorder %s1274_s25, 0 }
   0xa   : > { %s1290_s30 = scalar_select %p27_p1, %s1198_s23, %s29_s28  }
   0xb   : > { %p38_p5 = por %p37_p2, %p36_p0  ;;  %p1292_p6 = por %p43_p4, %p42_p3 }
   0xc   : > { %p171_p7 = scmp.eq.s32.totalorder %s1274_s25, 1  ;;  %p177_p8 = scmp.eq.s32.totalorder %s842_s26, 1 }
   0xd   : > { %p988_p10 = scmp.lt.s32.totalorder %s1202_s24, 2  ;;  %s212_s10 = sand.u32 1, %s1198_s23  }
   0xe   : > { %p1299_p11 = por %p171_p7, %p36_p0  ;;  %p1303_p12 = por %p177_p8, %p42_p3 }
   0xf   : > { %s973_s11 = smul.u32 384, %s1202_s24  ;;  %p1314_p13 = pnand %p988_p10, %p38_p5 }
  0x10   : > { %s1644_s8 = scalar_select %p1299_p11, 1, 0 }
  0x11   : > { %s1645_s9 = scalar_select %p1303_p12, 1, 0 }
  0x12   : > { %s972_s12 = smul.u32 24, %s212_s10  ;;  %s1312_s15 = scalar_lea.hbm %s1635_s0, %s973_s11 }
  0x13   : > { %s213_s19 = scalar_lea.sflag [#allocation3], %s212_s10  ;;  %s1106_s20 = scalar_lea.hbm %s1312_s15, 384 }
  0x14   : > { %s216_s17 = scalar_lea.vmem [#allocation2], %s972_s12  ;;  %p1107_p2 = scmp.ne.s32.totalorder %s1312_s15, %s1106_s20 }
  0x15   : > { %s224_s18 = sshll.u32 %s216_s17, 4  ;;  %p1108_p3 = pneg %p1314_p13  ;;  %s1319_s18 = int_to_ptr.vmem [resolvable:$true] %s224_s18 }
  0x16   : > { %s1111_s29 = scalar_lea.hbm %s1635_s0, 768  ;;  %p1112_p7 = scmp.lt.u32.totalorder %s1312_s15, %s1635_s0 }
  0x17   : > { %p1109_p4 = pnand %p1108_p3, %p1107_p2  ;;  %p1113_p8 = scmp.lt.u32.totalorder %s1111_s29, %s1106_s20 }
  0x18   : > { %p1115_p9 = scmp.lt.u32.totalorder %s1106_s20, %s1312_s15 }
  0x19   : > { %p1110_p5 = pneg %p1109_p4  ;;  %p1114_p10 = por %p1113_p8, %p1112_p7 }
  0x1b   : > { %p1116_p0 = por %p1115_p9, %p1114_p10 }
  0x1d   : > { %p1117_p1 = pnand %p1116_p0, %p1110_p5 }
  0x1f   : > { %1120 = shalt.err (!%p1117_p1)
}
  0x20   : > { %s1121_s10 = scalar_lea.vmem %s1319_s18, 384  ;;  %s1204_s12 = smov [#allocation2]  }
  0x21   : > { %p1122_p2 = scmp.ne.s32.totalorder %s1319_s18, %s1121_s10  ;;  %s1126_s14 = sshll.u32 %s1204_s12, 4  ;;  %s1127_s14 = int_to_ptr.vmem [resolvable:$false] %s1126_s14 }
  0x22   : > { %s1128_s17 = scalar_lea.vmem %s1127_s14, 768  ;;  %p1129_p11 = scmp.lt.s32.totalorder %s1319_s18, %s1127_s14 }
  0x23   : > { %p1124_p4 = pnand %p1122_p2, %p1108_p3  ;;  %p1130_p7 = scmp.lt.s32.totalorder %s1128_s17, %s1121_s10 }
  0x25   : > { %p1125_p12 = pneg %p1124_p4  ;;  %p1131_p8 = por %p1130_p7, %p1129_p11 }
  0x27   : > { %p1132_p9 = pnand %p1131_p8, %p1125_p12 }
  0x29   : > { %1135 = shalt.err (!%p1132_p9)
}
  0x2a   : > { %983 = dma.hbm_to_vmem [thread:$0]  (!%p1314_p13), %s1312_s15, 384, %s1319_s18, %s213_s19  }
  0x2b   : > { %p1647_p0 = scmp.lt.s32.totalorder %s1202_s24, 3  ;;  %p1648_p1 = scmp.ge.s32.totalorder %s1202_s24, 1 }
  0x2d   : > { %p230_p3 = pnand %p1648_p1, %p1647_p0 }
  0x2e   : > { %s1352_s20 = sand.u32 (!%p230_p3), 1, %s1194_s22  }
  0x2f   : > { %233 = sbr.rel (%p230_p3) target bundleno = 807 (0x327), region = 44  ;;  %s236_s28 = scalar_lea.sflag (!%p230_p3), [#allocation3], %s1352_s20 }
  0x30   : > { %s974_s26 = smul.u32 (!%p230_p3), 24, %s1352_s20 }
  0x32   : > { %s239_s16 = scalar_lea.vmem (!%p230_p3), [#allocation2], %s974_s26 }
  0x36   : > { %1181 = dma.done.wait (%p1292_p6), %s236_s28, 384  }
  0x37   : > { %1183 = vsyncadd (%p1292_p6), %s236_s28, 4294966912  ;;  %v1205_v0 = vmov 0.0|0.0   ;;  %v1363_v1 = vld [vmem:[%s239_s16 + $0x10] sm:$0xff]  ;;  %v1365_v2 = vld [vmem:[%s239_s16] sm:$0xff]  ;;  %s1206_s15 = smov 19   ;;  %s1207_s7 = smov 18   ;;  %v282_v9 = vlaneseq }
  0x38   : > { %932 = vmatprep.subr.bf16.mxu1 %v1205_v0  ;;  %v1367_v3 = vld [vmem:[%s239_s16 + $0x8] sm:$0xff]  ;;  %280 = vrot.lane.b32.xlu1 %v1363_v1, %s1206_s15  ;;  %s1208_s18 = smov 1   ;;  %s1209_s19 = smov 17   ;;  %v1212_v6 = vmov 0.0   ;;  %vm1214_vm0 = vmmov 0   ;;  %v1215_v7 = vmov 0  }
  0x39   : > { %v1034_v4 = vpack.i.bf16 %v1367_v3, %v1365_v2  ;;  %v1054_v5 = vpack.i.bf16 %v1363_v1, %v1367_v3  ;;  %s1210_s29 = smov 127   ;;  %s1211_s11 = smov 110   ;;  %431 = vmatprep.mubr.f32.mxu0 %v1212_v6  ;;  %892 = vmatprep.mubr.msk.f32.mxu1 %vm1214_vm0, %v1212_v6  ;;  %v273_v8 = vld [vmem:[%s1637_s2] sm:$0xff]  ;;  %v1407_v11 = vand.u32 127, %v282_v9  ;;  %vm363_vm9 = vcmask 588800  }
  0x3a   : > { %s1213_s13 = smov 111   ;;  %1105 = vset.pattern.permute.xlu0 %v1215_v7  ;;  %1069 = vset.pattern.permute.xlu1 %v1215_v7  ;;  %s1216_s10 = smov 109  }
  0x3b   : > { %1035 = vrot.lane.b32.xlu0 %v1034_v4, %s1206_s15  ;;  %vm284_vm1 = vcmp.lt.s32.totalorder %v1407_v11, 19  ;;  %vm294_vm2 = vcmp.lt.s32.totalorder %v1407_v11, 18  ;;  %vm314_vm3 = vcmp.lt.s32.totalorder %v1407_v11, 1  ;;  %vm304_vm4 = vcmp.lt.s32.totalorder %v1407_v11, 17  ;;  %p1649_p11 = scmp.ne.s32.totalorder %s1644_s8, 0  ;;  %s1217_s28 = smov [#allocation5]  }
  0x3c   : > { %292 = vrot.lane.b32.xlu1 %v1363_v1, %s1207_s7  ;;  %vm324_vm5 = vcmp.lt.s32.totalorder %v1407_v11, 127  ;;  %vm344_vm6 = vcmp.lt.s32.totalorder %v1407_v11, 110  ;;  %vm334_vm7 = vcmp.lt.s32.totalorder %v1407_v11, 111  ;;  %vm354_vm8 = vcmp.lt.s32.totalorder %v1407_v11, 109  ;;  %s1140_s16 = sshll.u32 %s1217_s28, 4  ;;  %s1141_s16 = int_to_ptr.vmem [resolvable:$false] %s1140_s16 }
  0x3d   : > { %s1142_s12 = scalar_lea.vmem %s1141_s16, 768 }
  0x3f   : > { %1040 = vrot.lane.b32.xlu0 %v1034_v4, %s1207_s7 }
  0x40   : > { %1050 = vrot.lane.b32.xlu1 %v1034_v4, %s1208_s18 }
  0x43   : > { %1045 = vrot.lane.b32.xlu0 %v1034_v4, %s1209_s19 }
  0x44   : > { %312 = vrot.lane.b32.xlu1 %v1363_v1, %s1208_s18 }
  0x47   : > { %302 = vrot.lane.b32.xlu0 %v1363_v1, %s1209_s19 }
  0x48   : > { %318 = vrot.lane.b32.xlu1 %v1365_v2, %s1210_s29 }
  0x4b   : > { %1055 = vrot.lane.b32.xlu0 %v1054_v5, %s1210_s29 }
  0x4c   : > { %1065 = vrot.lane.b32.xlu1 %v1054_v5, %s1211_s11 }
  0x4f   : > { %1060 = vrot.lane.b32.xlu0 %v1054_v5, %s1213_s13 }
  0x50   : > { %338 = vrot.lane.b32.xlu1 %v1365_v2, %s1211_s11 }
  0x53   : > { %328 = vrot.lane.b32.xlu0 %v1365_v2, %s1213_s13 }
  0x54   : > { %352 = vrot.lane.b32.xlu1 %v1363_v1, %s1216_s10 }
  0x57   : > { %350 = vrot.lane.b32.xlu0 %v1367_v3, %s1216_s10 }
  0x58   : > { %360 = vperm.xlu1 %1069, %v273_v8  }
  0x5b   : > { %348 = vrot.lane.b32.xlu0 %v1365_v2, %s1216_s10 }
  0xaa   : > { %v281_v10 = vpop.permute.xlu1 %280 }
  0xad   : > { %v1036_v12 = vpop.permute.xlu0 %1035 }
  0xae   : > { %v1038_v13 = vunpack.i.h.bf16 %v1036_v12  ;;  %v1037_v14 = vunpack.i.l.bf16 %v1036_v12  ;;  %v293_v15 = vpop.permute.xlu1 %292 }
  0xb0   : > { %v286_v20 = vsel %vm284_vm1, %v1037_v14, %v1038_v13  ;;  %v285_v21 = vsel %vm284_vm1, %v1038_v13, %v281_v10  ;;  %v287_v29 = vsel %vm284_vm1, %v281_v10, %v1037_v14 }
  0xb1   : > { %v1041_v16 = vpop.permute.xlu0 %1040 }
  0xb2   : > { %v1043_v17 = vunpack.i.h.bf16 %v1041_v16  ;;  %v1042_v18 = vunpack.i.l.bf16 %v1041_v16  ;;  %v1051_v19 = vpop.permute.xlu1 %1050  ;;  %v271_v16 = vld [vmem:[%s1636_s1] sm:$0xff] }
  0xb3   : > { %v1053_v22 = vunpack.i.h.bf16 %v1051_v19  ;;  %v1052_v23 = vunpack.i.l.bf16 %v1051_v19  ;;  %v513_v19 = vshrl.u32 %v282_v9, 7 }
  0xb4   : > { %v296_v24 = vsel %vm294_vm2, %v1042_v18, %v1043_v17  ;;  %v295_v25 = vsel %vm294_vm2, %v1043_v17, %v293_v15  ;;  %v297_v30 = vsel %vm294_vm2, %v293_v15, %v1042_v18 }
  0xb5   : > { %v1046_v26 = vpop.permute.xlu0 %1045  ;;  %v916_v27 = vpack.c.bf16 %v296_v24, %v286_v20  ;;  %v933_v28 = vpack.c.bf16 %v295_v25, %v285_v21  ;;  %v918_v33 = vpack.c.bf16 %v297_v30, %v287_v29  ;;  %v316_v34 = vsel %vm314_vm3, %v1052_v23, %v1053_v22 }
  0xb6   : > { %v1048_v31 = vunpack.i.h.bf16 %v1046_v26  ;;  %v1047_v32 = vunpack.i.l.bf16 %v1046_v26  ;;  %v313_v35 = vpop.permute.xlu1 %312  ;;  %v522_v20 = vsub.s32 2, %v513_v19  ;;  %v514_v24 = vsub.s32 0, %v513_v19 }
  0xb7   : > { %917 = vmatprep.subr.bf16.mxu0 %v916_v27  ;;  %934 = vmatpush3.bf16.msra.mxu1 %v933_v28  ;;  %v315_v36 = vsel %vm314_vm3, %v1053_v22, %v313_v35  ;;  %v317_v37 = vsel %vm314_vm3, %v313_v35, %v1052_v23  ;;  %v275_v22 = vld [vmem:[%s1638_s3] sm:$0x7]  ;;  %v518_v30 = vsub.s32 1, %v513_v19 }
  0xb8   : > { %919 = vmatpush1.bf16.msra.mxu0 %v918_v33  ;;  %v306_v38 = vsel %vm304_vm4, %v1047_v32, %v1048_v31  ;;  %935 = vmatprep.subr.bf16.mxu1 %v1205_v0  ;;  %v523_v28 = vrot.slane %v275_v22, %v522_v20 }
  0xb9   : > { %v303_v39 = vpop.permute.xlu0 %302  ;;  %v920_v40 = vpack.c.bf16 %v316_v34, %v306_v38  ;;  %v515_v34 = vrot.slane %v275_v22, %v514_v24 }
  0xba   : > { %v305_v41 = vsel %vm304_vm4, %v1048_v31, %v303_v39  ;;  %v307_v42 = vsel %vm304_vm4, %v303_v39, %v1047_v32  ;;  %v319_v45 = vpop.permute.xlu1 %318 }
  0xbb   : > { %v922_v43 = vpack.c.bf16 %v317_v37, %v307_v42  ;;  %v936_v44 = vpack.c.bf16 %v315_v36, %v305_v41  ;;  %921 = vmatprep.subr.bf16.mxu0 %v920_v40  ;;  %v519_v37 = vrot.slane %v275_v22, %v518_v30  ;;  %v274_v42 = vld [vmem:[%s1640_s5] sm:$0xff] }
  0xbd   : > { %v1056_v46 = vpop.permute.xlu0 %1055  ;;  %923 = vmatpush1.bf16.msra.mxu0 %v922_v43  ;;  %937 = vmatpush3.bf16.msra.mxu1 %v936_v44 }
  0xbe   : > { %v1058_v47 = vunpack.i.h.bf16 %v1056_v46  ;;  %v1057_v48 = vunpack.i.l.bf16 %v1056_v46  ;;  %938 = vmatprep.subr.bf16.mxu1 %v1205_v0  ;;  %v1066_v49 = vpop.permute.xlu1 %1065 }
  0xbf   : > { %v1068_v50 = vunpack.i.h.bf16 %v1066_v49  ;;  %v1067_v51 = vunpack.i.l.bf16 %v1066_v49 }
  0xc0   : > { %v325_v52 = vsel %vm324_vm5, %v1057_v48, %v1058_v47  ;;  %v327_v53 = vsel %vm324_vm5, %v1058_v47, %v319_v45  ;;  %v326_v57 = vsel %vm324_vm5, %v319_v45, %v1057_v48 }
  0xc1   : > { %v1061_v54 = vpop.permute.xlu0 %1060  ;;  %v924_v55 = vpack.c.bf16 %v325_v52, %v1367_v3  ;;  %v939_v56 = vpack.c.bf16 %v327_v53, %v1363_v1  ;;  %v926_v60 = vpack.c.bf16 %v326_v57, %v1365_v2  ;;  %v345_v61 = vsel %vm344_vm6, %v1067_v51, %v1068_v50 }
  0xc2   : > { %v1063_v58 = vunpack.i.h.bf16 %v1061_v54  ;;  %v1062_v59 = vunpack.i.l.bf16 %v1061_v54  ;;  %v339_v62 = vpop.permute.xlu1 %338 }
  0xc3   : > { %925 = vmatprep.subr.bf16.mxu0 %v924_v55  ;;  %940 = vmatpush3.bf16.msra.mxu1 %v939_v56  ;;  %v346_v63 = vsel %vm344_vm6, %v339_v62, %v1067_v51  ;;  %v347_v1 = vsel %vm344_vm6, %v1068_v50, %v339_v62 }
  0xc4   : > { %927 = vmatpush1.bf16.msra.mxu0 %v926_v60  ;;  %v335_v3 = vsel %vm334_vm7, %v1062_v59, %v1063_v58  ;;  %941 = vmatprep.subr.bf16.mxu1 %v1205_v0 }
  0xc5   : > { %v329_v4 = vpop.permute.xlu0 %328  ;;  %v928_v2 = vpack.c.bf16 %v345_v61, %v335_v3 }
  0xc6   : > { %v336_v5 = vsel %vm334_vm7, %v329_v4, %v1062_v59  ;;  %v337_v7 = vsel %vm334_vm7, %v1063_v58, %v329_v4  ;;  %v353_v12 = vpop.permute.xlu1 %352 }
  0xc7   : > { %v930_v8 = vpack.c.bf16 %v346_v63, %v336_v5  ;;  %v942_v10 = vpack.c.bf16 %v347_v1, %v337_v7  ;;  %929 = vmatprep.subr.bf16.mxu0 %v928_v2 }
  0xc9   : > { %v351_v13 = vpop.permute.xlu0 %350  ;;  %931 = vmatpush1.bf16.msra.mxu0 %v930_v8  ;;  %943 = vmatpush3.bf16.msra.mxu1 %v942_v10 }
  0xca   : > { %v355_v14 = vsel %vm354_vm8, %v351_v13, %v353_v12  ;;  %890 = vmatprep.subr.mxu1 %v1212_v6 }
  0xcb   : > { %383 = vmatprep.subr.mxu0 %v355_v14 }
  0xcd   : > { %v349_v15 = vpop.permute.xlu0 %348 }
  0xce   : > { %v356_v17 = vsel %vm354_vm8, %v349_v15, %v351_v13  ;;  %v357_v18 = vsel %vm354_vm8, %v353_v12, %v349_v15 }
  0xcf   : > { %384 = vmatpush1.msra.mxu0 %v356_v17  ;;  %891 = vmatpush3.msra.mxu1 %v357_v18 }
  0xd0   : > { %847 = vmatmul.mubr.msk.f32.vlgmr.msra.gmra.mrb[0].mxu0 %vm363_vm9, %v271_v16  ;;  %893 = vmatmul.mubr.msk.f32.vlgmr.msra.gmra.mrb[0].mxu1 %vm363_vm9, %v271_v16 }
  0xd1   : > { %960 = vmatprep.subr.bf16.mxu1 %v1205_v0  ;;  %913 = vmatprep.mubr.msk.f32.mxu1 %vm1214_vm0, %v1212_v6 }
  0xd2   : > { %674 = vmatprep.mubr.f32.mxu0 %v1212_v6 }
  0xd7   : > { %v361_v21 = vpop.permute.xlu1 %360 }
 0x1a3   : > { %v433_v23 = vpop.f32.mrb[0].mxu0  ;;  %v504_v25 = vpop.f32.mrb[0].mxu1 }
 0x1a4   : > { %v434_v26 = vadd.f32 %v433_v23, %v361_v21  ;;  %v505_v27 = vadd.f32 %v504_v25, %v361_v21  ;;  %v435_v29 = vpop.f32.mrb[1].mxu0  ;;  %v894_v31 = vpop.f32.mrb[1].mxu1 }
 0x1a5   : > { %v436_v32 = vadd.f32 %v435_v29, %v361_v21 }
 0x1a6   : > { %v510_v33 = vmax.f32 %v505_v27, 0.0  ;;  %v508_v35 = vmax.f32 %v434_v26, 0.0 }
 0x1a7   : > { %v509_v36 = vmax.f32 %v436_v32, 0.0 }
 0x1a8   : > { %v1485_v9 = vmul.f32 %v523_v28, %v510_v33  ;;  %v1491_v38 = vmul.f32 %v515_v34, %v508_v35 }
 0x1a9   : > { %v1493_v39 = vmul.f32 %v519_v37, %v509_v36 }
 0x1aa   : > { %543 = vrot.lane.b32.xlu1 %v1485_v9, %s1207_s7  ;;  %534 = vrot.lane.b32.xlu0 %v1485_v9, %s1206_s15 }
 0x1ab   : > { %v1075_v40 = vpack.i.bf16 %v1493_v39, %v1491_v38  ;;  %v1100_v41 = vpack.i.bf16 %v1485_v9, %v1493_v39 }
 0x1ae   : > { %561 = vrot.lane.b32.xlu1 %v1485_v9, %s1208_s18  ;;  %552 = vrot.lane.b32.xlu0 %v1485_v9, %s1209_s19 }
 0x1b2   : > { %1076 = vrot.lane.b32.xlu1 %v1075_v40, %s1207_s7  ;;  %1071 = vrot.lane.b32.xlu0 %v1075_v40, %s1206_s15 }
 0x1b6   : > { %1086 = vrot.lane.b32.xlu1 %v1075_v40, %s1208_s18  ;;  %1081 = vrot.lane.b32.xlu0 %v1075_v40, %s1209_s19 }
 0x1ba   : > { %566 = vrot.lane.b32.xlu1 %v1491_v38, %s1210_s29  ;;  %575 = vrot.lane.b32.xlu0 %v1491_v38, %s1213_s13 }
 0x1be   : > { %1101 = vrot.lane.b32.xlu1 %v1100_v41, %s1211_s11  ;;  %1091 = vrot.lane.b32.xlu0 %v1100_v41, %s1210_s29  ;;  %s975_s29 = smul.u32 384, %s1274_s25  ;;  %s758_s25 = scalar_lea.sflag [#allocation4], %s1352_s20 }
 0x1c0   : > { %s1591_s17 = scalar_lea.hbm %s1641_s6, %s975_s29 }
 0x1c2   : > { %584 = vrot.lane.b32.xlu1 %v1491_v38, %s1211_s11  ;;  %1096 = vrot.lane.b32.xlu0 %v1100_v41, %s1213_s13  ;;  %s267_s11 = scalar_lea.vmem [#allocation5], %s974_s26 }
 0x1c3   : > { %s772_s13 = sshll.u32 %s267_s11, 4  ;;  %s1593_s13 = int_to_ptr.vmem [resolvable:$true] %s772_s13 }
 0x1c4   : > { %s1136_s26 = scalar_lea.vmem %s1593_s13, 384  ;;  %p1143_p5 = scmp.lt.s32.totalorder %s1593_s13, %s1141_s16 }
 0x1c5   : > { %p1137_p6 = scmp.ne.s32.totalorder %s1593_s13, %s1136_s26  ;;  %p1144_p10 = scmp.lt.s32.totalorder %s1142_s12, %s1136_s26 }
 0x1c6   : > { %597 = vrot.lane.b32.xlu1 %v1485_v9, %s1216_s10  ;;  %595 = vrot.lane.b32.xlu0 %v1493_v39, %s1216_s10 }
 0x1c7   : > { %p1138_p12 = pnand %p1137_p6, %p1649_p11  ;;  %p1145_p2 = por %p1144_p10, %p1143_p5 }
 0x1c9   : > { %p1139_p13 = pneg %p1138_p12 }
 0x1ca   : > { %604 = vperm.xlu1 %1069, %v274_v42   ;;  %593 = vrot.lane.b32.xlu0 %v1491_v38, %s1216_s10 }
 0x1cb   : > { %p1146_p4 = pnand %p1145_p2, %p1139_p13 }
 0x21c   : > { %v544_v43 = vpop.permute.xlu1 %543  ;;  %v535_v44 = vpop.permute.xlu0 %534 }
 0x220   : > { %v562_v45 = vpop.permute.xlu1 %561  ;;  %v553_v46 = vpop.permute.xlu0 %552 }
 0x224   : > { %v1077_v47 = vpop.permute.xlu1 %1076  ;;  %v1072_v48 = vpop.permute.xlu0 %1071 }
 0x225   : > { %v1079_v49 = vunpack.i.h.bf16 %v1077_v47  ;;  %v1078_v50 = vunpack.i.l.bf16 %v1077_v47  ;;  %v1074_v51 = vunpack.i.h.bf16 %v1072_v48  ;;  %v1073_v52 = vunpack.i.l.bf16 %v1072_v48 }
 0x227   : > { %v545_v53 = vsel %vm294_vm2, %v1079_v49, %v544_v43  ;;  %v547_v54 = vsel %vm294_vm2, %v544_v43, %v1078_v50  ;;  %v536_v55 = vsel %vm284_vm1, %v1074_v51, %v535_v44  ;;  %v538_v56 = vsel %vm284_vm1, %v535_v44, %v1073_v52 }
 0x228   : > { %v961_v57 = vpack.c.bf16 %v545_v53, %v536_v55  ;;  %v946_v58 = vpack.c.bf16 %v547_v54, %v538_v56  ;;  %v1087_v59 = vpop.permute.xlu1 %1086  ;;  %v1082_v60 = vpop.permute.xlu0 %1081  ;;  %v537_v61 = vsel %vm284_vm1, %v1073_v52, %v1074_v51  ;;  %v546_v62 = vsel %vm294_vm2, %v1078_v50, %v1079_v49 }
 0x229   : > { %v1089_v63 = vunpack.i.h.bf16 %v1087_v59  ;;  %v1088_v1 = vunpack.i.l.bf16 %v1087_v59  ;;  %v1084_v3 = vunpack.i.h.bf16 %v1082_v60  ;;  %v1083_v4 = vunpack.i.l.bf16 %v1082_v60 }
 0x22a   : > { %v944_v2 = vpack.c.bf16 %v546_v62, %v537_v61  ;;  %962 = vmatpush3.bf16.msra.mxu1 %v961_v57 }
 0x22b   : > { %v563_v5 = vsel %vm314_vm3, %v1089_v63, %v562_v45  ;;  %v565_v7 = vsel %vm314_vm3, %v562_v45, %v1088_v1  ;;  %v554_v8 = vsel %vm304_vm4, %v1084_v3, %v553_v46  ;;  %v556_v10 = vsel %vm304_vm4, %v553_v46, %v1083_v4  ;;  %963 = vmatprep.subr.bf16.mxu1 %v1205_v0 }
 0x22c   : > { %v964_v12 = vpack.c.bf16 %v563_v5, %v554_v8  ;;  %945 = vmatprep.subr.bf16.mxu0 %v944_v2  ;;  %v567_v13 = vpop.permute.xlu1 %566  ;;  %v576_v14 = vpop.permute.xlu0 %575  ;;  %v555_v15 = vsel %vm304_vm4, %v1083_v4, %v1084_v3  ;;  %v564_v16 = vsel %vm314_vm3, %v1088_v1, %v1089_v63  ;;  %v950_v17 = vpack.c.bf16 %v565_v7, %v556_v10 }
 0x22d   : > { %947 = vmatpush1.bf16.msra.mxu0 %v946_v58  ;;  %v948_v18 = vpack.c.bf16 %v564_v16, %v555_v15 }
 0x22e   : > { %965 = vmatpush3.bf16.msra.mxu1 %v964_v12 }
 0x22f   : > { %949 = vmatprep.subr.bf16.mxu0 %v948_v18  ;;  %966 = vmatprep.subr.bf16.mxu1 %v1205_v0 }
 0x230   : > { %v1102_v19 = vpop.permute.xlu1 %1101  ;;  %v1092_v20 = vpop.permute.xlu0 %1091 }
 0x231   : > { %951 = vmatpush1.bf16.msra.mxu0 %v950_v17  ;;  %v1094_v21 = vunpack.i.h.bf16 %v1092_v20  ;;  %v1093_v22 = vunpack.i.l.bf16 %v1092_v20  ;;  %v1104_v23 = vunpack.i.h.bf16 %v1102_v19  ;;  %v1103_v24 = vunpack.i.l.bf16 %v1102_v19 }
 0x233   : > { %v574_v25 = vsel %vm324_vm5, %v1094_v21, %v567_v13  ;;  %v573_v26 = vsel %vm324_vm5, %v567_v13, %v1093_v22  ;;  %v572_v27 = vsel %vm324_vm5, %v1093_v22, %v1094_v21  ;;  %v590_v37 = vsel %vm344_vm6, %v1103_v24, %v1104_v23 }
 0x234   : > { %v967_v28 = vpack.c.bf16 %v574_v25, %v1485_v9  ;;  %v954_v29 = vpack.c.bf16 %v573_v26, %v1491_v38  ;;  %v585_v30 = vpop.permute.xlu1 %584  ;;  %v1097_v31 = vpop.permute.xlu0 %1096  ;;  %v952_v32 = vpack.c.bf16 %v572_v27, %v1493_v39 }
 0x235   : > { %v1099_v33 = vunpack.i.h.bf16 %v1097_v31  ;;  %v1098_v34 = vunpack.i.l.bf16 %v1097_v31  ;;  %v591_v35 = vsel %vm344_vm6, %v585_v30, %v1103_v24  ;;  %v592_v36 = vsel %vm344_vm6, %v1104_v23, %v585_v30 }
 0x236   : > { %953 = vmatprep.subr.bf16.mxu0 %v952_v32  ;;  %968 = vmatpush3.bf16.msra.mxu1 %v967_v28 }
 0x237   : > { %v583_v9 = vsel %vm334_vm7, %v1099_v33, %v576_v14  ;;  %v582_v38 = vsel %vm334_vm7, %v576_v14, %v1098_v34  ;;  %955 = vmatpush1.bf16.msra.mxu0 %v954_v29  ;;  %969 = vmatprep.subr.bf16.mxu1 %v1205_v0  ;;  %v581_v39 = vsel %vm334_vm7, %v1098_v34, %v1099_v33  ;;  %v272_v0 = vld [vmem:[%s1639_s4] sm:$0xff] }
 0x238   : > { %v970_v40 = vpack.c.bf16 %v592_v36, %v583_v9  ;;  %v958_v41 = vpack.c.bf16 %v591_v35, %v582_v38  ;;  %v598_v42 = vpop.permute.xlu1 %597  ;;  %v596_v43 = vpop.permute.xlu0 %595  ;;  %v956_v44 = vpack.c.bf16 %v590_v37, %v581_v39 }
 0x239   : > { %v599_v45 = vsel %vm354_vm8, %v596_v43, %v598_v42 }
 0x23a   : > { %957 = vmatprep.subr.bf16.mxu0 %v956_v44  ;;  %971 = vmatpush3.bf16.msra.mxu1 %v970_v40 }
 0x23b   : > { %959 = vmatpush1.bf16.msra.mxu0 %v958_v41  ;;  %911 = vmatprep.subr.mxu1 %v1212_v6 }
 0x23c   : > { %v594_v46 = vpop.permute.xlu0 %593  ;;  %626 = vmatprep.subr.mxu0 %v599_v45 }
 0x23d   : > { %v600_v47 = vsel %vm354_vm8, %v594_v46, %v596_v43  ;;  %v601_v48 = vsel %vm354_vm8, %v598_v42, %v594_v46 }
 0x23e   : > { %912 = vmatpush3.msra.mxu1 %v601_v48 }
 0x23f   : > { %627 = vmatpush1.msra.mxu0 %v600_v47  ;;  %914 = vmatmul.mubr.msk.f32.vlgmr.msra.gmra.mrb[2].mxu1 %vm363_vm9, %v272_v0 }
 0x240   : > { %849 = vmatmul.mubr.msk.f32.vlgmr.msra.gmra.mrb[2].mxu0 %vm363_vm9, %v272_v0 }
 0x249   : > { %v605_v6 = vpop.permute.xlu1 %604 }
 0x312   : > { %v747_v49 = vpop.f32.mrb[2].mxu1 }
 0x313   : > { %v748_v50 = vadd.f32 %v747_v49, %v605_v6  ;;  %v676_v51 = vpop.f32.mrb[2].mxu0  ;;  %v915_v52 = vpop.f32.mrb[3].mxu1 }
 0x314   : > { %v677_v53 = vadd.f32 %v676_v51, %v605_v6  ;;  %v678_v54 = vpop.f32.mrb[3].mxu0 }
 0x315   : > { %v753_v11 = vmax.f32 %v748_v50, 0.0  ;;  %v679_v55 = vadd.f32 %v678_v54, %v605_v6 }
 0x316   : > { %v751_v56 = vmax.f32 %v677_v53, 0.0 }
 0x317   : > { %756 = vst [vmem:[%s267_s11 + $0x10] sm:$0xff] %v753_v11  ;;  %v752_v57 = vmax.f32 %v679_v55, 0.0 }
 0x318   : > { %754 = vst [vmem:[%s267_s11] sm:$0xff] %v751_v56 }
 0x319   : > { %755 = vst [vmem:[%s267_s11 + $0x8] sm:$0xff] %v752_v57 }
 0x31a   : > { %1149 = shalt.err (!%p1146_p4)
}
 0x31b   : > { %s1150_s20 = scalar_lea.hbm %s1591_s17, 384  ;;  %s1154_s18 = scalar_lea.hbm %s1641_s6, 768 }
 0x31c   : > { %p1151_p7 = scmp.ne.s32.totalorder %s1591_s17, %s1150_s20  ;;  %p1155_p0 = scmp.lt.u32.totalorder %s1591_s17, %s1641_s6 }
 0x31d   : > { %p1156_p1 = scmp.lt.u32.totalorder %s1154_s18, %s1150_s20  ;;  %p1158_p6 = scmp.lt.u32.totalorder %s1150_s20, %s1591_s17 }
 0x31e   : > { %p1152_p8 = pnand %p1151_p7, %p1649_p11 }
 0x31f   : > { %p1157_p3 = por %p1156_p1, %p1155_p0 }
 0x320   : > { %p1153_p9 = pneg %p1152_p8 }
 0x321   : > { %p1159_p12 = por %p1158_p6, %p1157_p3 }
 0x323   : > { %p1160_p13 = pnand %p1159_p12, %p1153_p9 }
 0x325   : > { %1163 = shalt.err (!%p1160_p13)
}
 0x326   : > { %978 = dma.vmem_to_hbm [thread:$0]  (%p1649_p11), %s1593_s13, 384, %s1591_s17, %s758_s25  }
 0x327 PF: > { %s784_s11 = sand.u32 1, %s1190_s21   ;;  %p1650_p5 = scmp.ne.s32.totalorder %s1645_s9, 0 }
 0x328   : > { %p1651_p10 = scmp.ge.s32.totalorder %s1202_s24, 2  ;;  %s785_s10 = scalar_lea.sflag [#allocation4], %s784_s11 }
 0x32a   : > { %p985_p2 = pnand %p1651_p10, %p1650_p5 }
 0x32c   : > { %1185 = dma.done.wait (!%p985_p2), %s785_s10, 384  }
 0x32d   : > { %1187 = vsyncadd (!%p985_p2), %s785_s10, 4294966912  ;;  %p19_p4 = scmp.ge.s32.totalorder %s1278_s27, 4   ;;  %s1652_s21 = smov %s1194_s22 }
 0x32e   : > { %s1653_s22 = smov %s1198_s23  ;;  %s1654_s23 = smov %s1290_s30 }
 0x32f   : > { %s1655_s24 = smov %s1278_s27  ;;  %21 = sbr.rel (!%p19_p4) target bundleno = 5 (0x5), region = 89 }
 0x336   :  { %790 = vsyncpa [#allocation3], 1 }
 0x337   :  { %792 = vsyncpa [#allocation3 + $0x1], 1 }
 0x338   :  { %793 = vsyncpa [#allocation4], 1 }
 0x339   :  { %795 = vsyncpa [#allocation4 + $0x1], 1 }

</bundles_post_ra>
